<compile_context>
chip_gen: v7x
topology: tpu7x:2x2x1
jax: 0.10.0
libtpu: 0.0.40
codegen_flags: <defaults>
</compile_context>

<pallas_src>
import jax
import jax.numpy as jnp
from jax.experimental import pallas as pl
from jax.experimental.pallas import tpu as pltpu


def _constant_input_kernel(const_ref, out_ref):
    # const_ref: (1, F) block, resident across the grid (constant index_map).
    # out_ref:   (rows, F) lane-dense block for this batch chunk.
    # Single broadcast + single full-width store per grid step.
    out_ref[...] = jnp.broadcast_to(const_ref[...], out_ref.shape)


def _pick_rows_per_step(batch_size: int, feat: int, itemsize: int,
                        vmem_budget_bytes: int = 16 << 20) -> int:
    """Rows of the flat (B, F) output written per grid step.

    Prefer the whole batch (grid=(1,), minimal per-step overhead).  If that
    exceeds the VMEM budget (budget chosen to be safe even under v7x's 32 MiB
    scoped default, accounting for output double-buffering), pick the largest
    multiple of 8 that divides B and fits — multiples of 8 keep the sublane
    dim of the block legal when it is not the full batch extent.
    """
    def block_bytes(rows: int) -> int:
        return 2 * rows * feat * itemsize  # output is double-buffered

    if block_bytes(batch_size) <= vmem_budget_bytes:
        return batch_size

    best = None
    r = 8
    while r <= batch_size:
        if batch_size % r == 0 and block_bytes(r) <= vmem_budget_bytes:
            best = r
        r += 8
    # Fallback: full batch as one block (always layout-legal); for truly huge
    # B*F this may need vmem_limit_bytes raised, but it is never hit at
    # realistic ConstantInput sizes.
    return best if best is not None else batch_size


def constant_input(const: jax.Array, batch_size: int) -> jax.Array:
    """Replicates `const` (1, C, H, W) across the batch dim via a Pallas kernel.

    Equivalent to `const.repeat(batch_size, 1, 1, 1)` in PyTorch.
    """
    _, C, H, W = const.shape
    feat = C * H * W

    # Free reshape (row-major): present a lane-dense (1, F) / (B, F) layout.
    const_flat = const.reshape(1, feat)

    rows = _pick_rows_per_step(batch_size, feat, const.dtype.itemsize)
    grid = (batch_size // rows,)

    out_flat = pl.pallas_call(
        _constant_input_kernel,
        out_shape=jax.ShapeDtypeStruct((batch_size, feat), const.dtype),
        grid=grid,
        # const: the one-and-only (1, F) block, resident across all steps.
        in_specs=[pl.BlockSpec((1, feat), lambda b: (0, 0))],
        # output: one lane-dense chunk of `rows` batch rows per grid step.
        out_specs=pl.BlockSpec((rows, feat), lambda b: (b, 0)),
        compiler_params=pltpu.CompilerParams(
            dimension_semantics=("parallel",)),
    )(const_flat)

    return out_flat.reshape(batch_size, C, H, W)


if __name__ == "__main__":
    # Module config (matches ConstantInput defaults, kept small):
    channel = 4
    size = (4, 8)
    batch_size = 2

    # Deterministic "learned" parameter, analogous to torch.randn(1, C, H, W).
    key = jax.random.PRNGKey(0)
    const = jax.random.normal(key, (1, channel, size[0], size[1]),
                              dtype=jnp.float32)

    out = constant_input(const, batch_size)
    out = jax.block_until_ready(out)

    # Correctness check against the pure-JAX reference (broadcast repeat).
    ref = jnp.broadcast_to(const, (batch_size, channel, size[0], size[1]))
    assert out.shape == (batch_size, channel, size[0], size[1])
    assert out.dtype == const.dtype
    assert jnp.array_equal(out, ref)

    print("KERNEL_OK")
</pallas_src>

<mosaic_0001>
module attributes {stable_mosaic.version = 11 : i64} {
  func.func @_constant_input_kernel(%arg0: i32, %arg1: memref<1x128xf32, #tpu.memory_space<vmem>>, %arg2: memref<2x128xf32, #tpu.memory_space<vmem>>) attributes {dimension_semantics = [#tpu.dimension_semantics<parallel>], iteration_bounds = array<i64: 1>, scalar_prefetch = 0 : i64, scratch_operands = 0 : i64, tpu.core_type = #tpu.core_type<tc>, window_params = [{pipeline_mode = #tpu.pipeline_mode<synchronous>, transform_indices = @transform_0, window_bounds = array<i64: 1, 128>}, {transform_indices = @transform_1, window_bounds = array<i64: 2, 128>}]} {
    %c0 = arith.constant 0 : index
    %c0_0 = arith.constant 0 : index
    %0 = vector.load %arg1[%c0, %c0_0] : memref<1x128xf32, #tpu.memory_space<vmem>>, vector<1x128xf32>
    %1 = vector.shape_cast %0 : vector<1x128xf32> to vector<1x128xf32>
    %2 = vector.broadcast %1 : vector<1x128xf32> to vector<2x128xf32>
    %c0_1 = arith.constant 0 : index
    %c0_2 = arith.constant 0 : index
    %3 = vector.load %arg2[%c0_1, %c0_2] : memref<2x128xf32, #tpu.memory_space<vmem>>, vector<2x128xf32>
    tpu.vector_store %arg2[%c0_1, %c0_2], %2 {strides = array<i32>} : memref<2x128xf32, #tpu.memory_space<vmem>>, vector<2x128xf32>,
    return
  }
  func.func @transform_0(%arg0: i32) -> (i32, i32) {
    %c0_i32 = arith.constant 0 : i32
    %c0_i32_0 = arith.constant 0 : i32
    %c0_i32_1 = arith.constant 0 : i32
    return %c0_i32, %c0_i32_0 : i32, i32
  }
  func.func @transform_1(%arg0: i32) -> (i32, i32) {
    %c0_i32 = arith.constant 0 : i32
    %c0_i32_0 = arith.constant 0 : i32
    return %arg0, %c0_i32 : i32, i32
  }
}

</mosaic_0001>

<bundles_post_ra>
// kernel: tpu_custom_call.1
= control target key start
LH: loop header
LB: loop body
LE: loop exit
PB: predicated region body
PF: predicated region fallthrough
CT: control target
= control target key end

     0   :  { %6 = vsyncpa [#allocation3], 0  ;;  %s131_s0 = inlined_call_operand.hbm [shape: f32[1,128], index: 0, kind: input, shape index: {}]   ;;  %s132_s1 = inlined_call_operand.hbm [shape: f32[2,128], index: 1, kind: output, shape index: {}]  }
   0x1   :  { %7 = vsyncpa [#allocation4], 0  ;;  %s95_s6 = smov [#allocation2]   ;;  %s47_s10 = scalar_lea.hbm %s131_s0, 16 }
   0x2   :  { %s14_s7 = sshll.u32 %s95_s6, 4  ;;  %p48_p0 = scmp.ne.s32.totalorder %s131_s0, %s47_s10  ;;  %s15_s7 = int_to_ptr.vmem [resolvable:$true] %s14_s7 }
   0x3   :  { %p51_p1 = scmp.lt.u32.totalorder %s47_s10, %s131_s0 }
   0x5   :  { %p53_p2 = pnand %p51_p1, %p48_p0 }
   0x7   :  { %56 = shalt.err (!%p53_p2)
}
   0x8   :  { %s57_s15 = scalar_lea.vmem %s15_s7, 16  ;;  %s61_s16 = scalar_lea.vmem %s15_s7, 32 }
   0x9   :  { %p58_p3 = scmp.ne.s32.totalorder %s15_s7, %s57_s15  ;;  %p62_p4 = scmp.lt.s32.totalorder %s15_s7, %s15_s7 }
   0xa   :  { %p63_p5 = scmp.lt.s32.totalorder %s61_s16, %s57_s15 }
   0xc   :  { %p64_p6 = por %p63_p5, %p62_p4 }
   0xe   :  { %p65_p7 = pnand %p64_p6, %p58_p3 }
  0x10   :  { %68 = shalt.err (!%p65_p7)
}
  0x11   :  { %17 = dma.hbm_to_vmem [thread:$0]  %s131_s0, 16, %s15_s7, [#allocation3]  }
  0x12   :  { %91 = dma.done.wait [#allocation3], 16  }
  0x13   :  { %92 = vsyncadd [#allocation3], 4294967280  ;;  %s96_s19 = smov [#allocation5]   ;;  %v44_v0 = vld [vmem:[#allocation2] ss:$0 sm:$0xff] }
  0x14   :  { %s35_s20 = sshll.u32 %s96_s19, 4  ;;  %28 = vst [vmem:[#allocation5] sm:$0x3] %v44_v0  ;;  %s36_s20 = int_to_ptr.vmem [resolvable:$true] %s35_s20 }
  0x15   :  { %s69_s21 = scalar_lea.vmem %s36_s20, 32  ;;  %p74_p9 = scmp.lt.s32.totalorder %s36_s20, %s36_s20 }
  0x16   :  { %p70_p8 = scmp.ne.s32.totalorder %s36_s20, %s69_s21  ;;  %p75_p10 = scmp.lt.s32.totalorder %s69_s21, %s69_s21 }
  0x18   :  { %p76_p11 = por %p75_p10, %p74_p9 }
  0x1a   :  { %p77_p12 = pnand %p76_p11, %p70_p8 }
  0x1c   :  { %80 = shalt.err (!%p77_p12)
}
  0x1d   :  { %s81_s24 = scalar_lea.hbm %s132_s1, 32 }
  0x1e   :  { %p82_p13 = scmp.ne.s32.totalorder %s132_s1, %s81_s24  ;;  %p85_p0 = scmp.lt.u32.totalorder %s81_s24, %s132_s1 }
  0x20   :  { %p87_p1 = pnand %p85_p0, %p82_p13 }
  0x22   :  { %90 = shalt.err (!%p87_p1)
}
  0x23   :  { %38 = dma.vmem_to_hbm [thread:$0]  %s36_s20, 32, %s132_s1, [#allocation4]  }
  0x24   :  { %93 = dma.done.wait [#allocation4], 32  }
  0x25   :  { %94 = vsyncadd [#allocation4], 4294967264 }
  0x26   :  { %42 = vsyncpa [#allocation3], 1 }
  0x27   :  { %43 = vsyncpa [#allocation4], 1 }

</bundles_post_ra>
